<compile_context>
chip_gen: v7x
topology: tpu7x:2x2x1
jax: 0.10.0
libtpu: 0.0.40
codegen_flags: <defaults>
</compile_context>

<pallas_src>
import functools

import jax
import jax.numpy as jnp
from jax import lax
from jax.experimental import pallas as pl
from jax.experimental.pallas import tpu as pltpu


def _swav_fused_kernel(out_ref, loss_ref, *, total_crops, batch, inv_temp,
                       inv_eps, n_iters, inv_b, inv_p, scale, crops_for_assign):
    """Fused: log_softmax over all crops, Sinkhorn + cross-entropy per assign crop."""
    B = batch
    x_all = out_ref[...].astype(jnp.float32)                 # (total_crops*B, P)
    P = x_all.shape[-1]

    # ---- log_softmax(output / T) for ALL rows in one pass (single EUP sweep) ----
    t = x_all * inv_temp
    mx = jnp.max(t, axis=-1, keepdims=True)                  # (TC*B, 1)
    lse = mx + jnp.log(jnp.sum(jnp.exp(t - mx), axis=-1, keepdims=True))
    logp = t - lse                                           # (TC*B, P)

    # S(b, p) = sum over crops v of logp_v ; reshape splits sublane dim on an
    # 8-row boundary (B % 8 == 0) so it is layout-preserving.
    s = jnp.sum(logp.reshape(total_crops, B, P), axis=0)     # (B, P)

    loss = jnp.zeros((1, 1), jnp.float32)
    for crop_id in crops_for_assign:                         # static, fully unrolled
        lo = crop_id * B
        out_c = x_all[lo:lo + B, :]                          # (B, P) static slice
        logp_c = logp[lo:lo + B, :]                          # reuse, no recompute

        # ---- Sinkhorn-Knopp on Q = exp(out/eps).T, carried in (B, P) layout ----
        # Row ops on Q == column ops here; avoids a lane/sublane transpose.
        m_ = jnp.exp(out_c * inv_eps)
        tot = jnp.sum(jnp.sum(m_, axis=1, keepdims=True), axis=0, keepdims=True)
        m_ = m_ * pl.reciprocal(tot)                         # Q /= sum(Q) (overflow guard)

        def _sink_body(_, m_):
            col = jnp.sum(m_, axis=0, keepdims=True)         # u = Q.sum(dim=1)   (1, P)
            m_ = m_ * (inv_p * pl.reciprocal(col))           # Q *= (r / u)[:, None]
            row = jnp.sum(m_, axis=1, keepdims=True)         # Q.sum(dim=0)       (B, 1)
            m_ = m_ * (inv_b * pl.reciprocal(row))           # Q *= (c / .)[None, :]
            return m_

        if n_iters > 0:
            m_ = lax.fori_loop(0, n_iters, _sink_body, m_, unroll=True)
            # After the last step every row sums to 1/B, so the explicit
            # renormalization (Q / Q.sum(0)).T collapses to a scalar multiply.
            q = m_ * float(B)
        else:
            q = m_ * pl.reciprocal(jnp.sum(m_, axis=1, keepdims=True))

        # subloss_i = - mean_b sum_p q * (S - logp_i); scalar factors folded once.
        per_row = jnp.sum(q * (s - logp_c), axis=-1, keepdims=True)   # (B, 1)
        loss = loss - jnp.sum(per_row, axis=0, keepdims=True) * (inv_b * scale)

    loss_ref[...] = loss                                     # single (1,1) store


def swav_loss_forward(output, embedding, prototype_weights, batch_size,
                      queue=None, use_queue=False, *,
                      temperature, crops_for_assign, nmb_crops,
                      sinkhorn_iterations, epsilon):
    """Pallas implementation of SWAVLoss.forward (queue=None, single device)."""
    del embedding, prototype_weights  # only used by the (unimplemented) queue path
    total_crops = int(sum(nmb_crops))
    n_assign = len(crops_for_assign)
    B = int(batch_size)
    P = output.shape[1]
    assert output.shape[0] == total_crops * B
    assert B % 8 == 0, "batch_size should be a multiple of 8 sublanes (f32)"
    assert P % 128 == 0, "prototypes dim should be lane-dense (multiple of 128)"

    kernel = functools.partial(
        _swav_fused_kernel,
        total_crops=total_crops,
        batch=B,
        inv_temp=1.0 / temperature,
        inv_eps=1.0 / epsilon,
        n_iters=int(sinkhorn_iterations),
        inv_b=1.0 / B,
        inv_p=1.0 / P,
        scale=1.0 / ((total_crops - 1) * n_assign),
        crops_for_assign=tuple(int(c) for c in crops_for_assign))

    loss2d = pl.pallas_call(
        kernel,
        out_shape=jax.ShapeDtypeStruct((1, 1), jnp.float32),
        grid_spec=pltpu.PrefetchScalarGridSpec(
            num_scalar_prefetch=0,
            grid=(1,),  # single step: whole problem fits VMEM comfortably
            in_specs=[pl.BlockSpec((total_crops * B, P), lambda i: (0, 0))],
            out_specs=pl.BlockSpec((1, 1), lambda i: (0, 0)),
        ),
        compiler_params=pltpu.CompilerParams(
            dimension_semantics=("arbitrary",),
            vmem_limit_bytes=32 * 1024 * 1024),  # safe on v7x's 64 MiB VMEM too
    )(output)

    return loss2d[0, 0], queue, use_queue


def reference_swav_loss(output, batch_size, *, temperature, crops_for_assign,
                        nmb_crops, sinkhorn_iterations, epsilon):
    """Pure-JAX reference, line-for-line with the PyTorch module (queue=None)."""
    total_crops = int(sum(nmb_crops))
    B = int(batch_size)
    loss = jnp.float32(0.0)
    for crop_id in crops_for_assign:
        out = output[B * crop_id:B * (crop_id + 1)]
        Q = jnp.exp(out / epsilon).T                      # (K=P, B)
        Q = Q / jnp.sum(Q)
        K, Bq = Q.shape
        r = jnp.ones((K,), jnp.float32) / K
        c = jnp.ones((Bq,), jnp.float32) / Bq
        for _ in range(sinkhorn_iterations):
            u = jnp.sum(Q, axis=1)
            Q = Q * (r / u)[:, None]
            Q = Q * (c / jnp.sum(Q, axis=0))[None, :]
        q = (Q / jnp.sum(Q, axis=0, keepdims=True)).T     # (B, P)
        q = q[-B:]
        subloss = jnp.float32(0.0)
        for v in range(total_crops):
            if v == crop_id:
                continue
            p = jax.nn.softmax(output[B * v:B * (v + 1)] / temperature, axis=1)
            subloss = subloss - jnp.mean(jnp.sum(q * jnp.log(p), axis=1))
        loss = loss + subloss / (total_crops - 1)
    return loss / len(crops_for_assign)


if __name__ == "__main__":
    # SWAVLoss config (matches the module __init__ signature)
    TEMPERATURE = 0.1
    CROPS_FOR_ASSIGN = (0, 1)
    NMB_CROPS = (2, 4)
    SINKHORN_ITERATIONS = 3
    EPSILON = 0.05
    GPUS = 0          # single-device sinkhorn path
    NUM_NODES = 1

    BATCH = 16        # per-crop batch size (multiple of 8 sublanes for f32)
    FEAT = 32         # embedding dim (only used to construct `output`)
    PROTOS = 128      # number of prototypes (lane-dense last dim)

    total_crops = sum(NMB_CROPS)
    key = jax.random.PRNGKey(0)
    k_emb, k_proto = jax.random.split(key)

    embedding = jax.random.normal(k_emb, (total_crops * BATCH, FEAT), jnp.float32)
    embedding = embedding / jnp.linalg.norm(embedding, axis=1, keepdims=True)
    prototype_weights = jax.random.normal(k_proto, (PROTOS, FEAT), jnp.float32)
    prototype_weights = prototype_weights / jnp.linalg.norm(
        prototype_weights, axis=1, keepdims=True)
    # SwAV "output" = normalized embeddings scored against normalized prototypes.
    output = embedding @ prototype_weights.T              # (total_crops*B, P)

    loss, queue, use_queue = swav_loss_forward(
        output, embedding, prototype_weights, BATCH,
        queue=None, use_queue=False,
        temperature=TEMPERATURE, crops_for_assign=CROPS_FOR_ASSIGN,
        nmb_crops=NMB_CROPS, sinkhorn_iterations=SINKHORN_ITERATIONS,
        epsilon=EPSILON)
    loss = jax.block_until_ready(loss)

    ref = reference_swav_loss(
        output, BATCH, temperature=TEMPERATURE, crops_for_assign=CROPS_FOR_ASSIGN,
        nmb_crops=NMB_CROPS, sinkhorn_iterations=SINKHORN_ITERATIONS,
        epsilon=EPSILON)

    assert jnp.isfinite(loss), "loss is not finite"
    assert jnp.allclose(loss, ref, rtol=1e-4, atol=1e-4), (
        f"mismatch: pallas={float(loss)} ref={float(ref)}")
    assert queue is None and use_queue is False

    print("KERNEL_OK")
</pallas_src>

<mosaic_0001>
module attributes {stable_mosaic.version = 11 : i64} {
  func.func @_swav_fused_kernel(%arg0: i32, %arg1: memref<96x128xf32, #tpu.memory_space<vmem>>, %arg2: memref<1x1xf32, #tpu.memory_space<vmem>>) attributes {dimension_semantics = [#tpu.dimension_semantics<arbitrary>], iteration_bounds = array<i64: 1>, scalar_prefetch = 0 : i64, scratch_operands = 0 : i64, tpu.core_type = #tpu.core_type<tc>, window_params = [{pipeline_mode = #tpu.pipeline_mode<synchronous>, transform_indices = @transform_0, window_bounds = array<i64: 96, 128>}, {pipeline_mode = #tpu.pipeline_mode<synchronous>, transform_indices = @transform_1, window_bounds = array<i64: 1, 1>}]} {
    %c0 = arith.constant 0 : index
    %c0_0 = arith.constant 0 : index
    %0 = vector.load %arg1[%c0, %c0_0] : memref<96x128xf32, #tpu.memory_space<vmem>>, vector<96x128xf32>
    %cst = arith.constant 1.000000e+01 : f32
    %1 = vector.broadcast %cst : f32 to vector<96x128xf32>
    %2 = arith.mulf %0, %1 : vector<96x128xf32>
    %cst_1 = arith.constant dense<0xFF800000> : vector<96xf32>
    %3 = vector.multi_reduction <maximumf>, %2, %cst_1 [1] : vector<96x128xf32> to vector<96xf32>
    %4 = vector.shape_cast %3 : vector<96xf32> to vector<96x1xf32>
    %5 = vector.broadcast %4 : vector<96x1xf32> to vector<96x128xf32>
    %6 = arith.subf %2, %5 : vector<96x128xf32>
    %7 = math.exp %6 : vector<96x128xf32>
    %cst_2 = arith.constant dense<0.000000e+00> : vector<96xf32>
    %8 = vector.multi_reduction <add>, %7, %cst_2 [1] : vector<96x128xf32> to vector<96xf32>
    %9 = vector.shape_cast %8 : vector<96xf32> to vector<96x1xf32>
    %10 = math.log %9 : vector<96x1xf32>
    %11 = arith.addf %4, %10 : vector<96x1xf32>
    %12 = vector.broadcast %11 : vector<96x1xf32> to vector<96x128xf32>
    %13 = arith.subf %2, %12 : vector<96x128xf32>
    %14 = vector.shape_cast %13 : vector<96x128xf32> to vector<6x16x128xf32>
    %cst_3 = arith.constant dense<0.000000e+00> : vector<16x128xf32>
    %15 = vector.multi_reduction <add>, %14, %cst_3 [0] : vector<6x16x128xf32> to vector<16x128xf32>
    %cst_4 = arith.constant 0.000000e+00 : f32
    %16 = vector.broadcast %cst_4 : f32 to vector<1x1xf32>
    %17 = vector.extract_strided_slice %0 {offsets = [0, 0], sizes = [16, 128], strides = [1, 1]} : vector<96x128xf32> to vector<16x128xf32>
    %18 = vector.extract_strided_slice %13 {offsets = [0, 0], sizes = [16, 128], strides = [1, 1]} : vector<96x128xf32> to vector<16x128xf32>
    %cst_5 = arith.constant 2.000000e+01 : f32
    %19 = vector.broadcast %cst_5 : f32 to vector<16x128xf32>
    %20 = arith.mulf %17, %19 : vector<16x128xf32>
    %21 = math.exp %20 : vector<16x128xf32>
    %cst_6 = arith.constant dense<0.000000e+00> : vector<16xf32>
    %22 = vector.multi_reduction <add>, %21, %cst_6 [1] : vector<16x128xf32> to vector<16xf32>
    %23 = vector.shape_cast %22 : vector<16xf32> to vector<16x1xf32>
    %cst_7 = arith.constant dense<0.000000e+00> : vector<1xf32>
    %24 = vector.multi_reduction <add>, %23, %cst_7 [0] : vector<16x1xf32> to vector<1xf32>
    %25 = vector.shape_cast %24 : vector<1xf32> to vector<1x1xf32>
    %26 = tpu.reciprocal %25 : vector<1x1xf32> -> vector<1x1xf32>
    %27 = vector.broadcast %26 : vector<1x1xf32> to vector<16x128xf32>
    %28 = arith.mulf %21, %27 : vector<16x128xf32>
    %c0_i32 = arith.constant 0 : i32
    %cst_8 = arith.constant dense<0.000000e+00> : vector<128xf32>
    %29 = vector.multi_reduction <add>, %28, %cst_8 [0] : vector<16x128xf32> to vector<128xf32>
    %30 = vector.shape_cast %29 : vector<128xf32> to vector<1x128xf32>
    %31 = tpu.reciprocal %30 : vector<1x128xf32> -> vector<1x128xf32>
    %cst_9 = arith.constant 7.812500e-03 : f32
    %32 = vector.broadcast %cst_9 : f32 to vector<1x128xf32>
    %33 = arith.mulf %32, %31 : vector<1x128xf32>
    %34 = vector.broadcast %33 : vector<1x128xf32> to vector<16x128xf32>
    %35 = arith.mulf %28, %34 : vector<16x128xf32>
    %cst_10 = arith.constant dense<0.000000e+00> : vector<16xf32>
    %36 = vector.multi_reduction <add>, %35, %cst_10 [1] : vector<16x128xf32> to vector<16xf32>
    %37 = vector.shape_cast %36 : vector<16xf32> to vector<16x1xf32>
    %38 = tpu.reciprocal %37 : vector<16x1xf32> -> vector<16x1xf32>
    %cst_11 = arith.constant 6.250000e-02 : f32
    %39 = vector.broadcast %cst_11 : f32 to vector<16x1xf32>
    %40 = arith.mulf %39, %38 : vector<16x1xf32>
    %41 = vector.broadcast %40 : vector<16x1xf32> to vector<16x128xf32>
    %42 = arith.mulf %35, %41 : vector<16x128xf32>
    %c1_i32 = arith.constant 1 : i32
    %cst_12 = arith.constant dense<0.000000e+00> : vector<128xf32>
    %43 = vector.multi_reduction <add>, %42, %cst_12 [0] : vector<16x128xf32> to vector<128xf32>
    %44 = vector.shape_cast %43 : vector<128xf32> to vector<1x128xf32>
    %45 = tpu.reciprocal %44 : vector<1x128xf32> -> vector<1x128xf32>
    %cst_13 = arith.constant 7.812500e-03 : f32
    %46 = vector.broadcast %cst_13 : f32 to vector<1x128xf32>
    %47 = arith.mulf %46, %45 : vector<1x128xf32>
    %48 = vector.broadcast %47 : vector<1x128xf32> to vector<16x128xf32>
    %49 = arith.mulf %42, %48 : vector<16x128xf32>
    %cst_14 = arith.constant dense<0.000000e+00> : vector<16xf32>
    %50 = vector.multi_reduction <add>, %49, %cst_14 [1] : vector<16x128xf32> to vector<16xf32>
    %51 = vector.shape_cast %50 : vector<16xf32> to vector<16x1xf32>
    %52 = tpu.reciprocal %51 : vector<16x1xf32> -> vector<16x1xf32>
    %cst_15 = arith.constant 6.250000e-02 : f32
    %53 = vector.broadcast %cst_15 : f32 to vector<16x1xf32>
    %54 = arith.mulf %53, %52 : vector<16x1xf32>
    %55 = vector.broadcast %54 : vector<16x1xf32> to vector<16x128xf32>
    %56 = arith.mulf %49, %55 : vector<16x128xf32>
    %c2_i32 = arith.constant 2 : i32
    %cst_16 = arith.constant dense<0.000000e+00> : vector<128xf32>
    %57 = vector.multi_reduction <add>, %56, %cst_16 [0] : vector<16x128xf32> to vector<128xf32>
    %58 = vector.shape_cast %57 : vector<128xf32> to vector<1x128xf32>
    %59 = tpu.reciprocal %58 : vector<1x128xf32> -> vector<1x128xf32>
    %cst_17 = arith.constant 7.812500e-03 : f32
    %60 = vector.broadcast %cst_17 : f32 to vector<1x128xf32>
    %61 = arith.mulf %60, %59 : vector<1x128xf32>
    %62 = vector.broadcast %61 : vector<1x128xf32> to vector<16x128xf32>
    %63 = arith.mulf %56, %62 : vector<16x128xf32>
    %cst_18 = arith.constant dense<0.000000e+00> : vector<16xf32>
    %64 = vector.multi_reduction <add>, %63, %cst_18 [1] : vector<16x128xf32> to vector<16xf32>
    %65 = vector.shape_cast %64 : vector<16xf32> to vector<16x1xf32>
    %66 = tpu.reciprocal %65 : vector<16x1xf32> -> vector<16x1xf32>
    %cst_19 = arith.constant 6.250000e-02 : f32
    %67 = vector.broadcast %cst_19 : f32 to vector<16x1xf32>
    %68 = arith.mulf %67, %66 : vector<16x1xf32>
    %69 = vector.broadcast %68 : vector<16x1xf32> to vector<16x128xf32>
    %70 = arith.mulf %63, %69 : vector<16x128xf32>
    %cst_20 = arith.constant 1.600000e+01 : f32
    %71 = vector.broadcast %cst_20 : f32 to vector<16x128xf32>
    %72 = arith.mulf %70, %71 : vector<16x128xf32>
    %73 = arith.subf %15, %18 : vector<16x128xf32>
    %74 = arith.mulf %72, %73 : vector<16x128xf32>
    %cst_21 = arith.constant dense<0.000000e+00> : vector<16xf32>
    %75 = vector.multi_reduction <add>, %74, %cst_21 [1] : vector<16x128xf32> to vector<16xf32>
    %76 = vector.shape_cast %75 : vector<16xf32> to vector<16x1xf32>
    %cst_22 = arith.constant dense<0.000000e+00> : vector<1xf32>
    %77 = vector.multi_reduction <add>, %76, %cst_22 [0] : vector<16x1xf32> to vector<1xf32>
    %78 = vector.shape_cast %77 : vector<1xf32> to vector<1x1xf32>
    %cst_23 = arith.constant 6.250000e-03 : f32
    %79 = vector.broadcast %cst_23 : f32 to vector<1x1xf32>
    %80 = arith.mulf %78, %79 : vector<1x1xf32>
    %81 = arith.subf %16, %80 : vector<1x1xf32>
    %82 = vector.extract_strided_slice %0 {offsets = [16, 0], sizes = [16, 128], strides = [1, 1]} : vector<96x128xf32> to vector<16x128xf32>
    %83 = vector.extract_strided_slice %13 {offsets = [16, 0], sizes = [16, 128], strides = [1, 1]} : vector<96x128xf32> to vector<16x128xf32>
    %cst_24 = arith.constant 2.000000e+01 : f32
    %84 = vector.broadcast %cst_24 : f32 to vector<16x128xf32>
    %85 = arith.mulf %82, %84 : vector<16x128xf32>
    %86 = math.exp %85 : vector<16x128xf32>
    %cst_25 = arith.constant dense<0.000000e+00> : vector<16xf32>
    %87 = vector.multi_reduction <add>, %86, %cst_25 [1] : vector<16x128xf32> to vector<16xf32>
    %88 = vector.shape_cast %87 : vector<16xf32> to vector<16x1xf32>
    %cst_26 = arith.constant dense<0.000000e+00> : vector<1xf32>
    %89 = vector.multi_reduction <add>, %88, %cst_26 [0] : vector<16x1xf32> to vector<1xf32>
    %90 = vector.shape_cast %89 : vector<1xf32> to vector<1x1xf32>
    %91 = tpu.reciprocal %90 : vector<1x1xf32> -> vector<1x1xf32>
    %92 = vector.broadcast %91 : vector<1x1xf32> to vector<16x128xf32>
    %93 = arith.mulf %86, %92 : vector<16x128xf32>
    %c0_i32_27 = arith.constant 0 : i32
    %cst_28 = arith.constant dense<0.000000e+00> : vector<128xf32>
    %94 = vector.multi_reduction <add>, %93, %cst_28 [0] : vector<16x128xf32> to vector<128xf32>
    %95 = vector.shape_cast %94 : vector<128xf32> to vector<1x128xf32>
    %96 = tpu.reciprocal %95 : vector<1x128xf32> -> vector<1x128xf32>
    %cst_29 = arith.constant 7.812500e-03 : f32
    %97 = vector.broadcast %cst_29 : f32 to vector<1x128xf32>
    %98 = arith.mulf %97, %96 : vector<1x128xf32>
    %99 = vector.broadcast %98 : vector<1x128xf32> to vector<16x128xf32>
    %100 = arith.mulf %93, %99 : vector<16x128xf32>
    %cst_30 = arith.constant dense<0.000000e+00> : vector<16xf32>
    %101 = vector.multi_reduction <add>, %100, %cst_30 [1] : vector<16x128xf32> to vector<16xf32>
    %102 = vector.shape_cast %101 : vector<16xf32> to vector<16x1xf32>
    %103 = tpu.reciprocal %102 : vector<16x1xf32> -> vector<16x1xf32>
    %cst_31 = arith.constant 6.250000e-02 : f32
    %104 = vector.broadcast %cst_31 : f32 to vector<16x1xf32>
    %105 = arith.mulf %104, %103 : vector<16x1xf32>
    %106 = vector.broadcast %105 : vector<16x1xf32> to vector<16x128xf32>
    %107 = arith.mulf %100, %106 : vector<16x128xf32>
    %c1_i32_32 = arith.constant 1 : i32
    %cst_33 = arith.constant dense<0.000000e+00> : vector<128xf32>
    %108 = vector.multi_reduction <add>, %107, %cst_33 [0] : vector<16x128xf32> to vector<128xf32>
    %109 = vector.shape_cast %108 : vector<128xf32> to vector<1x128xf32>
    %110 = tpu.reciprocal %109 : vector<1x128xf32> -> vector<1x128xf32>
    %cst_34 = arith.constant 7.812500e-03 : f32
    %111 = vector.broadcast %cst_34 : f32 to vector<1x128xf32>
    %112 = arith.mulf %111, %110 : vector<1x128xf32>
    %113 = vector.broadcast %112 : vector<1x128xf32> to vector<16x128xf32>
    %114 = arith.mulf %107, %113 : vector<16x128xf32>
    %cst_35 = arith.constant dense<0.000000e+00> : vector<16xf32>
    %115 = vector.multi_reduction <add>, %114, %cst_35 [1] : vector<16x128xf32> to vector<16xf32>
    %116 = vector.shape_cast %115 : vector<16xf32> to vector<16x1xf32>
    %117 = tpu.reciprocal %116 : vector<16x1xf32> -> vector<16x1xf32>
    %cst_36 = arith.constant 6.250000e-02 : f32
    %118 = vector.broadcast %cst_36 : f32 to vector<16x1xf32>
    %119 = arith.mulf %118, %117 : vector<16x1xf32>
    %120 = vector.broadcast %119 : vector<16x1xf32> to vector<16x128xf32>
    %121 = arith.mulf %114, %120 : vector<16x128xf32>
    %c2_i32_37 = arith.constant 2 : i32
    %cst_38 = arith.constant dense<0.000000e+00> : vector<128xf32>
    %122 = vector.multi_reduction <add>, %121, %cst_38 [0] : vector<16x128xf32> to vector<128xf32>
    %123 = vector.shape_cast %122 : vector<128xf32> to vector<1x128xf32>
    %124 = tpu.reciprocal %123 : vector<1x128xf32> -> vector<1x128xf32>
    %cst_39 = arith.constant 7.812500e-03 : f32
    %125 = vector.broadcast %cst_39 : f32 to vector<1x128xf32>
    %126 = arith.mulf %125, %124 : vector<1x128xf32>
    %127 = vector.broadcast %126 : vector<1x128xf32> to vector<16x128xf32>
    %128 = arith.mulf %121, %127 : vector<16x128xf32>
    %cst_40 = arith.constant dense<0.000000e+00> : vector<16xf32>
    %129 = vector.multi_reduction <add>, %128, %cst_40 [1] : vector<16x128xf32> to vector<16xf32>
    %130 = vector.shape_cast %129 : vector<16xf32> to vector<16x1xf32>
    %131 = tpu.reciprocal %130 : vector<16x1xf32> -> vector<16x1xf32>
    %cst_41 = arith.constant 6.250000e-02 : f32
    %132 = vector.broadcast %cst_41 : f32 to vector<16x1xf32>
    %133 = arith.mulf %132, %131 : vector<16x1xf32>
    %134 = vector.broadcast %133 : vector<16x1xf32> to vector<16x128xf32>
    %135 = arith.mulf %128, %134 : vector<16x128xf32>
    %cst_42 = arith.constant 1.600000e+01 : f32
    %136 = vector.broadcast %cst_42 : f32 to vector<16x128xf32>
    %137 = arith.mulf %135, %136 : vector<16x128xf32>
    %138 = arith.subf %15, %83 : vector<16x128xf32>
    %139 = arith.mulf %137, %138 : vector<16x128xf32>
    %cst_43 = arith.constant dense<0.000000e+00> : vector<16xf32>
    %140 = vector.multi_reduction <add>, %139, %cst_43 [1] : vector<16x128xf32> to vector<16xf32>
    %141 = vector.shape_cast %140 : vector<16xf32> to vector<16x1xf32>
    %cst_44 = arith.constant dense<0.000000e+00> : vector<1xf32>
    %142 = vector.multi_reduction <add>, %141, %cst_44 [0] : vector<16x1xf32> to vector<1xf32>
    %143 = vector.shape_cast %142 : vector<1xf32> to vector<1x1xf32>
    %cst_45 = arith.constant 6.250000e-03 : f32
    %144 = vector.broadcast %cst_45 : f32 to vector<1x1xf32>
    %145 = arith.mulf %143, %144 : vector<1x1xf32>
    %146 = arith.subf %81, %145 : vector<1x1xf32>
    %c0_46 = arith.constant 0 : index
    %c0_47 = arith.constant 0 : index
    %147 = vector.load %arg2[%c0_46, %c0_47] : memref<1x1xf32, #tpu.memory_space<vmem>>, vector<1x1xf32>
    tpu.vector_store %arg2[%c0_46, %c0_47], %146 {strides = array<i32>} : memref<1x1xf32, #tpu.memory_space<vmem>>, vector<1x1xf32>,
    return
  }
  func.func @transform_0(%arg0: i32) -> (i32, i32) {
    %c0_i32 = arith.constant 0 : i32
    %c0_i32_0 = arith.constant 0 : i32
    %c0_i32_1 = arith.constant 0 : i32
    return %c0_i32, %c0_i32_0 : i32, i32
  }
  func.func @transform_1(%arg0: i32) -> (i32, i32) {
    %c0_i32 = arith.constant 0 : i32
    %c0_i32_0 = arith.constant 0 : i32
    %c0_i32_1 = arith.constant 0 : i32
    return %c0_i32, %c0_i32_0 : i32, i32
  }
}

</mosaic_0001>

<bundles_post_ra>
// kernel: tpu_custom_call.1
= control target key start
LH: loop header
LB: loop body
LE: loop exit
PB: predicated region body
PF: predicated region fallthrough
CT: control target
= control target key end

     0   :  { %6 = vsyncpa [#allocation3], 0  ;;  %s776_s0 = inlined_call_operand.hbm [shape: f32[96,128], index: 0, kind: input, shape index: {}]   ;;  %s777_s1 = inlined_call_operand.hbm [shape: f32[1,1], index: 1, kind: output, shape index: {}]  }
   0x1   :  { %7 = vsyncpa [#allocation4], 0  ;;  %s558_s6 = smov [#allocation2]   ;;  %s510_s10 = scalar_lea.hbm %s776_s0, 1536 }
   0x2   :  { %s13_s7 = sshll.u32 %s558_s6, 4  ;;  %p511_p0 = scmp.ne.s32.totalorder %s776_s0, %s510_s10  ;;  %s14_s7 = int_to_ptr.vmem [resolvable:$true] %s13_s7 }
   0x3   :  { %p514_p1 = scmp.lt.u32.totalorder %s510_s10, %s776_s0 }
   0x5   :  { %p516_p2 = pnand %p514_p1, %p511_p0 }
   0x7   :  { %519 = shalt.err (!%p516_p2)
}
   0x8   :  { %s520_s15 = scalar_lea.vmem %s14_s7, 1536  ;;  %p525_p4 = scmp.lt.s32.totalorder %s14_s7, %s14_s7 }
   0x9   :  { %p521_p3 = scmp.ne.s32.totalorder %s14_s7, %s520_s15  ;;  %p526_p5 = scmp.lt.s32.totalorder %s520_s15, %s520_s15 }
   0xb   :  { %p527_p6 = por %p526_p5, %p525_p4 }
   0xd   :  { %p528_p7 = pnand %p527_p6, %p521_p3 }
   0xf   :  { %531 = shalt.err (!%p528_p7)
}
  0x10   :  { %s559_s16 = smov 128   ;;  %s560_s17 = smov 8  }
  0x11   :  { %19 = dma.hbm_to_vmem [thread:$0]  %s776_s0, 1536, %s14_s7, [#allocation3], %s559_s16, %s559_s16, %s560_s17  }
  0x12   :  { %554 = dma.done.wait [#allocation3], 1536  }
  0x13   :  { %555 = vsyncadd [#allocation3], 4294965760  ;;  %v584_v0 = vld [vmem:[#allocation2 + $0x10] sm:$0xff]  ;;  %v586_v1 = vld [vmem:[#allocation2] sm:$0xff]  ;;  %s561_s0 = smov [#allocation5]   ;;  %vm393_vm0 = vcmask 0  }
  0x14   :  { %v588_v2 = vld [vmem:[#allocation2 + $0x18] sm:$0xff]  ;;  %v291_v3 = vmul.f32 20.0, %v584_v0  ;;  %v189_v4 = vmul.f32 20.0, %v586_v1  ;;  %v593_v6 = vld [vmem:[#allocation2 + $0x8] sm:$0xff]  ;;  %s401_s20 = sshll.u32 %s561_s0, 4  ;;  %s402_s20 = int_to_ptr.vmem [resolvable:$true] %s401_s20 }
  0x15   :  { %v292_v5 = vmul.f32 20.0, %v588_v2  ;;  %v190_v7 = vmul.f32 20.0, %v593_v6  ;;  %s532_s21 = scalar_lea.vmem %s402_s20, 16  ;;  %s536_s22 = scalar_lea.vmem %s402_s20, 32 }
  0x16   :  { %v293_v8 = vmul.f32 1.442695, %v291_v3  ;;  %v191_v9 = vmul.f32 1.442695, %v189_v4  ;;  %p533_p8 = scmp.ne.s32.totalorder %s402_s20, %s532_s21  ;;  %p537_p9 = scmp.lt.s32.totalorder %s402_s20, %s402_s20 }
  0x17   :  { %v295_v10 = vmul.f32 1.442695, %v292_v5  ;;  %v193_v11 = vmul.f32 1.442695, %v190_v7  ;;  %p538_p10 = scmp.lt.s32.totalorder %s536_s22, %s532_s21 }
  0x18   :  { %414 = vpow2.f32 %v293_v8 }
  0x19   :  { %416 = vpow2.f32 %v191_v9  ;;  %p539_p11 = por %p538_p10, %p537_p9 }
  0x1a   :  { %418 = vpow2.f32 %v295_v10 }
  0x1b   :  { %420 = vpow2.f32 %v193_v11  ;;  %p540_p12 = pnand %p539_p11, %p533_p8 }
  0x22   :  { %v415_v12 = vpop.eup %414 }
  0x23   :  { %v417_v13 = vpop.eup %416  ;;  %297 = vadd.xlane.f32.xlu1 %v415_v12 }
  0x24   :  { %v419_v14 = vpop.eup %418  ;;  %195 = vadd.xlane.f32.xlu0 %v417_v13 }
  0x25   :  { %v421_v15 = vpop.eup %420 }
  0x27   :  { %299 = vadd.xlane.f32.xlu1 %v419_v14 }
  0x28   :  { %197 = vadd.xlane.f32.xlu0 %v421_v15 }
  0xb0   :  { %v298_v16 = vpop.xlane.xlu1 %297 }
  0xb1   :  { %v196_v17 = vpop.xlane.xlu0 %195 }
  0xb4   :  { %v300_v18 = vpop.xlane.xlu1 %299 }
  0xb5   :  { %v301_v19 = vadd.f32 %v300_v18, %v298_v16  ;;  %v198_v20 = vpop.xlane.xlu0 %197 }
  0xb6   :  { %v199_v21 = vadd.f32 %v198_v20, %v196_v17 }
  0xb7   :  { %v302_v22 = vrot.slane %v301_v19, 4 }
  0xb8   :  { %v200_v23 = vrot.slane %v199_v21, 4 }
  0xb9   :  { %v303_v24 = vadd.f32 %v302_v22, %v301_v19 }
  0xba   :  { %v201_v25 = vadd.f32 %v200_v23, %v199_v21 }
  0xbb   :  { %v304_v26 = vrot.slane %v303_v24, 2 }
  0xbc   :  { %v202_v27 = vrot.slane %v201_v25, 2 }
  0xbd   :  { %v305_v28 = vadd.f32 %v304_v26, %v303_v24 }
  0xbe   :  { %v203_v29 = vadd.f32 %v202_v27, %v201_v25 }
  0xbf   :  { %v306_v30 = vrot.slane %v305_v28, 1 }
  0xc0   :  { %v204_v31 = vrot.slane %v203_v29, 1 }
  0xc1   :  { %v307_v32 = vadd.f32 %v306_v30, %v305_v28 }
  0xc2   :  { %v205_v33 = vadd.f32 %v204_v31, %v203_v29 }
  0xc3   :  { %422 = vrcp.f32 %v307_v32 }
  0xc4   :  { %424 = vrcp.f32 %v205_v33 }
  0xcd   :  { %v423_v34 = vpop.eup %422 }
  0xce   :  { %v425_v35 = vpop.eup %424  ;;  %v309_v36 = vmul.f32 %v423_v34, %v415_v12  ;;  %v310_v37 = vmul.f32 %v423_v34, %v419_v14 }
  0xcf   :  { %v207_v38 = vmul.f32 %v425_v35, %v417_v13  ;;  %v208_v39 = vmul.f32 %v425_v35, %v421_v15 }
  0xd0   :  { %v311_v40 = vadd.f32 %v310_v37, %v309_v36 }
  0xd1   :  { %v209_v41 = vadd.f32 %v208_v39, %v207_v38 }
  0xd2   :  { %v312_v42 = vrot.slane %v311_v40, 4 }
  0xd3   :  { %v210_v43 = vrot.slane %v209_v41, 4 }
  0xd4   :  { %v313_v44 = vadd.f32 %v312_v42, %v311_v40  ;;  %v609_v40 = vmul.f32 10.0, %v593_v6  ;;  %v617_v42 = vmul.f32 10.0, %v588_v2 }
  0xd5   :  { %v211_v45 = vadd.f32 %v210_v43, %v209_v41  ;;  %v612_v41 = vmul.f32 10.0, %v586_v1  ;;  %v620_v43 = vmul.f32 10.0, %v584_v0 }
  0xd6   :  { %v314_v46 = vrot.slane %v313_v44, 2 }
  0xd7   :  { %v212_v47 = vrot.slane %v211_v45, 2 }
  0xd8   :  { %v315_v48 = vadd.f32 %v314_v46, %v313_v44  ;;  %v28_v44 = vld [vmem:[#allocation2 + $0x28] sm:$0xff]  ;;  %v30_v46 = vld [vmem:[#allocation2 + $0x38] sm:$0xff] }
  0xd9   :  { %v213_v49 = vadd.f32 %v212_v47, %v211_v45  ;;  %v27_v45 = vld [vmem:[#allocation2 + $0x20] sm:$0xff]  ;;  %v624_v6 = vmul.f32 10.0, %v28_v44  ;;  %v29_v47 = vld [vmem:[#allocation2 + $0x30] sm:$0xff]  ;;  %v630_v2 = vmul.f32 10.0, %v30_v46 }
  0xda   :  { %v316_v50 = vrot.slane %v315_v48, 1  ;;  %v626_v1 = vmul.f32 10.0, %v27_v45  ;;  %v632_v0 = vmul.f32 10.0, %v29_v47 }
  0xdb   :  { %v214_v51 = vrot.slane %v213_v49, 1 }
  0xdc   :  { %v317_v52 = vadd.f32 %v316_v50, %v315_v48  ;;  %v32_v48 = vld [vmem:[#allocation2 + $0x48] sm:$0xff] }
  0xdd   :  { %v215_v53 = vadd.f32 %v214_v51, %v213_v49  ;;  %v31_v49 = vld [vmem:[#allocation2 + $0x40] sm:$0xff]  ;;  %v636_v50 = vmul.f32 10.0, %v32_v48 }
  0xde   :  { %426 = vrcp.f32 %v317_v52  ;;  %v638_v51 = vmul.f32 10.0, %v31_v49  ;;  %v34_v52 = vld [vmem:[#allocation2 + $0x58] sm:$0xff] }
  0xdf   :  { %428 = vrcp.f32 %v215_v53  ;;  %v33_v53 = vld [vmem:[#allocation2 + $0x50] sm:$0xff] }
  0xe8   :  { %v427_v54 = vpop.eup %426 }
  0xe9   :  { %v429_v55 = vpop.eup %428  ;;  %v319_v59 = vmul.f32 0.0078125, %v427_v54  ;;  %v642_v54 = vmul.f32 10.0, %v34_v52 }
  0xea   :  { %v217_v56 = vmul.f32 0.0078125, %v429_v55  ;;  %v644_v55 = vmul.f32 10.0, %v33_v53 }
  0xeb   :  { %v321_v60 = vmul.f32 %v319_v59, %v310_v37  ;;  %v320_v61 = vmul.f32 %v319_v59, %v309_v36 }
  0xec   :  { %v219_v57 = vmul.f32 %v217_v56, %v208_v39  ;;  %v218_v58 = vmul.f32 %v217_v56, %v207_v38 }
  0xee   :  { %222 = vadd.xlane.f32.xlu1 %v219_v57  ;;  %220 = vadd.xlane.f32.xlu0 %v218_v58 }
  0xf2   :  { %324 = vadd.xlane.f32.xlu1 %v321_v60  ;;  %322 = vadd.xlane.f32.xlu0 %v320_v61 }
 0x17b   :  { %v223_v62 = vpop.xlane.xlu1 %222  ;;  %v221_v63 = vpop.xlane.xlu0 %220 }
 0x17c   :  { %430 = vrcp.f32 %v223_v62 }
 0x17d   :  { %432 = vrcp.f32 %v221_v63 }
 0x17f   :  { %v325_v3 = vpop.xlane.xlu1 %324  ;;  %v323_v4 = vpop.xlane.xlu0 %322 }
 0x180   :  { %434 = vrcp.f32 %v325_v3 }
 0x181   :  { %436 = vrcp.f32 %v323_v4 }
 0x186   :  { %v431_v5 = vpop.eup %430 }
 0x187   :  { %v433_v7 = vpop.eup %432  ;;  %v227_v8 = vmul.f32 0.0625, %v431_v5 }
 0x188   :  { %v226_v9 = vmul.f32 0.0625, %v433_v7 }
 0x189   :  { %v229_v10 = vmul.f32 %v227_v8, %v219_v57 }
 0x18a   :  { %v435_v11 = vpop.eup %434  ;;  %v228_v12 = vmul.f32 %v226_v9, %v218_v58 }
 0x18b   :  { %v437_v13 = vpop.eup %436  ;;  %v329_v14 = vmul.f32 0.0625, %v435_v11 }
 0x18c   :  { %v328_v15 = vmul.f32 0.0625, %v437_v13  ;;  %v230_v16 = vadd.f32 %v229_v10, %v228_v12 }
 0x18d   :  { %v331_v17 = vmul.f32 %v329_v14, %v321_v60 }
 0x18e   :  { %v330_v18 = vmul.f32 %v328_v15, %v320_v61  ;;  %v231_v19 = vrot.slane %v230_v16, 4 }
 0x190   :  { %v232_v20 = vadd.f32 %v231_v19, %v230_v16  ;;  %v332_v21 = vadd.f32 %v331_v17, %v330_v18 }
 0x192   :  { %v233_v22 = vrot.slane %v232_v20, 2  ;;  %v333_v23 = vrot.slane %v332_v21, 4 }
 0x194   :  { %v234_v24 = vadd.f32 %v233_v22, %v232_v20  ;;  %v334_v25 = vadd.f32 %v333_v23, %v332_v21 }
 0x196   :  { %v235_v26 = vrot.slane %v234_v24, 1  ;;  %v335_v27 = vrot.slane %v334_v25, 2 }
 0x198   :  { %v236_v28 = vadd.f32 %v235_v26, %v234_v24  ;;  %v336_v29 = vadd.f32 %v335_v27, %v334_v25 }
 0x19a   :  { %438 = vrcp.f32 %v236_v28  ;;  %v337_v30 = vrot.slane %v336_v29, 1 }
 0x19c   :  { %v338_v31 = vadd.f32 %v337_v30, %v336_v29 }
 0x19e   :  { %440 = vrcp.f32 %v338_v31 }
 0x1a4   :  { %v439_v32 = vpop.eup %438 }
 0x1a5   :  { %v238_v33 = vmul.f32 0.0078125, %v439_v32 }
 0x1a7   :  { %v596_v34 = vmul.f32 %v238_v33, %v229_v10  ;;  %v598_v35 = vmul.f32 %v238_v33, %v228_v12 }
 0x1a8   :  { %v441_v36 = vpop.eup %440 }
 0x1a9   :  { %243 = vadd.xlane.f32.xlu1 %v596_v34  ;;  %241 = vadd.xlane.f32.xlu0 %v598_v35  ;;  %v340_v37 = vmul.f32 0.0078125, %v441_v36 }
 0x1ab   :  { %v602_v38 = vmul.f32 %v340_v37, %v331_v17  ;;  %v604_v39 = vmul.f32 %v340_v37, %v330_v18 }
 0x1ad   :  { %345 = vadd.xlane.f32.xlu1 %v602_v38  ;;  %343 = vadd.xlane.f32.xlu0 %v604_v39 }
 0x1b1   :  { %49 = vmax.xlane.f32.xlu1 %v609_v40  ;;  %47 = vmax.xlane.f32.xlu0 %v612_v41 }
 0x1b5   :  { %53 = vmax.xlane.f32.xlu1 %v617_v42  ;;  %51 = vmax.xlane.f32.xlu0 %v620_v43 }
 0x1b9   :  { %57 = vmax.xlane.f32.xlu1 %v624_v6  ;;  %55 = vmax.xlane.f32.xlu0 %v626_v1 }
 0x1bd   :  { %61 = vmax.xlane.f32.xlu1 %v630_v2  ;;  %59 = vmax.xlane.f32.xlu0 %v632_v0 }
 0x1c1   :  { %65 = vmax.xlane.f32.xlu1 %v636_v50  ;;  %63 = vmax.xlane.f32.xlu0 %v638_v51 }
 0x1c5   :  { %69 = vmax.xlane.f32.xlu1 %v642_v54  ;;  %67 = vmax.xlane.f32.xlu0 %v644_v55 }
 0x236   :  { %v244_v56 = vpop.xlane.xlu1 %243  ;;  %v242_v57 = vpop.xlane.xlu0 %241 }
 0x237   :  { %442 = vrcp.f32 %v244_v56 }
 0x238   :  { %444 = vrcp.f32 %v242_v57 }
 0x23a   :  { %v346_v58 = vpop.xlane.xlu1 %345  ;;  %v344_v59 = vpop.xlane.xlu0 %343 }
 0x23b   :  { %446 = vrcp.f32 %v346_v58 }
 0x23c   :  { %448 = vrcp.f32 %v344_v59 }
 0x23e   :  { %v648_v60 = vpop.xlane.xlu1 %49  ;;  %v650_v61 = vpop.xlane.xlu0 %47 }
 0x23f   :  { %v72_v62 = vsub.f32 %v609_v40, %v648_v60  ;;  %v71_v63 = vsub.f32 %v612_v41, %v650_v61 }
 0x241   :  { %v443_v3 = vpop.eup %442  ;;  %v85_v4 = vmul.f32 1.442695, %v72_v62  ;;  %v83_v5 = vmul.f32 1.442695, %v71_v63 }
 0x242   :  { %v445_v7 = vpop.eup %444  ;;  %v248_v8 = vmul.f32 0.0625, %v443_v3  ;;  %v656_v9 = vpop.xlane.xlu1 %53 }
 0x243   :  { %v658_v10 = vpop.xlane.xlu0 %51  ;;  %v247_v11 = vmul.f32 0.0625, %v445_v7  ;;  %450 = vpow2.f32 %v85_v4  ;;  %v74_v12 = vsub.f32 %v617_v42, %v656_v9 }
 0x244   :  { %v73_v13 = vsub.f32 %v620_v43, %v658_v10  ;;  %452 = vpow2.f32 %v83_v5  ;;  %v665_v14 = vmul.f32 %v248_v8, %v596_v34 }
 0x245   :  { %v447_v15 = vpop.eup %446  ;;  %v668_v16 = vmul.f32 %v247_v11, %v598_v35  ;;  %v89_v17 = vmul.f32 1.442695, %v74_v12 }
 0x246   :  { %v87_v18 = vmul.f32 1.442695, %v73_v13  ;;  %v449_v19 = vpop.eup %448  ;;  %v350_v20 = vmul.f32 0.0625, %v447_v15  ;;  %v670_v21 = vpop.xlane.xlu1 %57 }
 0x247   :  { %v672_v22 = vpop.xlane.xlu0 %55  ;;  %v349_v23 = vmul.f32 0.0625, %v449_v19  ;;  %454 = vpow2.f32 %v89_v17  ;;  %v76_v24 = vsub.f32 %v624_v6, %v670_v21  ;;  %v251_v26 = vadd.f32 %v665_v14, %v668_v16 }
 0x248   :  { %v75_v25 = vsub.f32 %v626_v1, %v672_v22  ;;  %456 = vpow2.f32 %v87_v18  ;;  %v681_v27 = vmul.f32 %v350_v20, %v602_v38 }
 0x249   :  { %v684_v28 = vmul.f32 %v349_v23, %v604_v39  ;;  %v93_v29 = vmul.f32 1.442695, %v76_v24  ;;  %v252_v33 = vrot.slane %v251_v26, 4 }
 0x24a   :  { %v91_v30 = vmul.f32 1.442695, %v75_v25  ;;  %v686_v31 = vpop.xlane.xlu1 %61 }
 0x24b   :  { %v688_v32 = vpop.xlane.xlu0 %59  ;;  %458 = vpow2.f32 %v93_v29  ;;  %v78_v34 = vsub.f32 %v630_v2, %v686_v31  ;;  %v353_v36 = vadd.f32 %v681_v27, %v684_v28  ;;  %v253_v37 = vadd.f32 %v252_v33, %v251_v26 }
 0x24c   :  { %v77_v35 = vsub.f32 %v632_v0, %v688_v32  ;;  %460 = vpow2.f32 %v91_v30 }
 0x24d   :  { %v451_v38 = vpop.eup %450  ;;  %v97_v39 = vmul.f32 1.442695, %v78_v34  ;;  %v354_v45 = vrot.slane %v353_v36, 4  ;;  %v254_v49 = vrot.slane %v253_v37, 2 }
 0x24e   :  { %v95_v44 = vmul.f32 1.442695, %v77_v35  ;;  %v453_v46 = vpop.eup %452  ;;  %109 = vadd.xlane.f32.xlu1 %v451_v38  ;;  %v696_v47 = vpop.xlane.xlu1 %65 }
 0x24f   :  { %v698_v48 = vpop.xlane.xlu0 %63  ;;  %462 = vpow2.f32 %v97_v39  ;;  %v80_v52 = vsub.f32 %v636_v50, %v696_v47  ;;  %107 = vadd.xlane.f32.xlu0 %v453_v46  ;;  %v355_v56 = vadd.f32 %v354_v45, %v353_v36  ;;  %v255_v57 = vadd.f32 %v254_v49, %v253_v37 }
 0x250   :  { %v79_v53 = vsub.f32 %v638_v51, %v698_v48  ;;  %464 = vpow2.f32 %v95_v44 }
 0x251   :  { %v455_v58 = vpop.eup %454  ;;  %v101_v59 = vmul.f32 1.442695, %v80_v52  ;;  %v356_v63 = vrot.slane %v355_v56, 2  ;;  %v256_v7 = vrot.slane %v255_v57, 1 }
 0x252   :  { %v99_v62 = vmul.f32 1.442695, %v79_v53  ;;  %v457_v3 = vpop.eup %456  ;;  %113 = vadd.xlane.f32.xlu1 %v455_v58  ;;  %v704_v4 = vpop.xlane.xlu1 %69 }
 0x253   :  { %v706_v5 = vpop.xlane.xlu0 %67  ;;  %466 = vpow2.f32 %v101_v59  ;;  %v82_v8 = vsub.f32 %v642_v54, %v704_v4  ;;  %111 = vadd.xlane.f32.xlu0 %v457_v3  ;;  %v357_v12 = vadd.f32 %v356_v63, %v355_v56  ;;  %v257_v13 = vadd.f32 %v256_v7, %v255_v57 }
 0x254   :  { %v81_v11 = vsub.f32 %v644_v55, %v706_v5  ;;  %468 = vpow2.f32 %v99_v62 }
 0x255   :  { %v459_v15 = vpop.eup %458  ;;  %v105_v17 = vmul.f32 1.442695, %v82_v8  ;;  %v358_v19 = vrot.slane %v357_v12, 1  ;;  %470 = vrcp.f32 %v257_v13 }
 0x256   :  { %v103_v18 = vmul.f32 1.442695, %v81_v11  ;;  %v461_v20 = vpop.eup %460  ;;  %117 = vadd.xlane.f32.xlu1 %v459_v15 }
 0x257   :  { %472 = vpow2.f32 %v105_v17  ;;  %115 = vadd.xlane.f32.xlu0 %v461_v20  ;;  %v359_v23 = vadd.f32 %v358_v19, %v357_v12 }
 0x258   :  { %474 = vpow2.f32 %v103_v18 }
 0x259   :  { %v463_v24 = vpop.eup %462  ;;  %476 = vrcp.f32 %v359_v23 }
 0x25a   :  { %v465_v25 = vpop.eup %464  ;;  %121 = vadd.xlane.f32.xlu1 %v463_v24 }
 0x25b   :  { %119 = vadd.xlane.f32.xlu0 %v465_v25 }
 0x25d   :  { %v467_v26 = vpop.eup %466 }
 0x25e   :  { %v469_v29 = vpop.eup %468  ;;  %125 = vadd.xlane.f32.xlu1 %v467_v26 }
 0x25f   :  { %123 = vadd.xlane.f32.xlu0 %v469_v29  ;;  %v471_v30 = vpop.eup %470 }
 0x260   :  { %v259_v34 = vmul.f32 0.0078125, %v471_v30 }
 0x261   :  { %v473_v33 = vpop.eup %472 }
 0x262   :  { %v475_v35 = vpop.eup %474  ;;  %129 = vadd.xlane.f32.xlu1 %v473_v33  ;;  %v713_v37 = vmul.f32 %v259_v34, %v665_v14  ;;  %v716_v39 = vmul.f32 %v259_v34, %v668_v16 }
 0x263   :  { %v477_v36 = vpop.eup %476  ;;  %127 = vadd.xlane.f32.xlu0 %v475_v35 }
 0x264   :  { %v361_v38 = vmul.f32 0.0078125, %v477_v36 }
 0x266   :  { %264 = vadd.xlane.f32.xlu1 %v713_v37  ;;  %v721_v44 = vmul.f32 %v361_v38, %v681_v27  ;;  %v724_v45 = vmul.f32 %v361_v38, %v684_v28 }
 0x267   :  { %262 = vadd.xlane.f32.xlu0 %v716_v39 }
 0x26a   :  { %366 = vadd.xlane.f32.xlu1 %v721_v44 }
 0x26b   :  { %364 = vadd.xlane.f32.xlu0 %v724_v45 }
 0x2db   :  { %v110_v14 = vpop.xlane.xlu1 %109 }
 0x2dc   :  { %v108_v46 = vpop.xlane.xlu0 %107 }
 0x2df   :  { %v114_v49 = vpop.xlane.xlu1 %113 }
 0x2e0   :  { %478 = vlog2.f32 %v114_v49  ;;  %v112_v16 = vpop.xlane.xlu0 %111 }
 0x2e1   :  { %480 = vlog2.f32 %v112_v16 }
 0x2e2   :  { %482 = vlog2.f32 %v110_v14 }
 0x2e3   :  { %484 = vlog2.f32 %v108_v46  ;;  %v118_v52 = vpop.xlane.xlu1 %117 }
 0x2e4   :  { %486 = vlog2.f32 %v118_v52  ;;  %v116_v53 = vpop.xlane.xlu0 %115 }
 0x2e5   :  { %488 = vlog2.f32 %v116_v53 }
 0x2e7   :  { %v122_v27 = vpop.xlane.xlu1 %121 }
 0x2e8   :  { %490 = vlog2.f32 %v122_v27  ;;  %v120_v28 = vpop.xlane.xlu0 %119 }
 0x2e9   :  { %492 = vlog2.f32 %v120_v28 }
 0x2ea   :  { %v479_v56 = vpop.eup %478 }
 0x2eb   :  { %v481_v57 = vpop.eup %480  ;;  %v126_v58 = vpop.xlane.xlu1 %125  ;;  %v138_v3 = vmul.f32 0.6931472, %v479_v56 }
 0x2ec   :  { %v483_v59 = vpop.eup %482  ;;  %494 = vlog2.f32 %v126_v58  ;;  %v124_v62 = vpop.xlane.xlu0 %123  ;;  %v136_v8 = vmul.f32 0.6931472, %v481_v57 }
 0x2ed   :  { %v485_v63 = vpop.eup %484  ;;  %496 = vlog2.f32 %v124_v62  ;;  %v134_v12 = vmul.f32 0.6931472, %v483_v59  ;;  %v158_v20 = vadd.f32 %v138_v3, %v656_v9 }
 0x2ee   :  { %v487_v7 = vpop.eup %486  ;;  %v132_v17 = vmul.f32 0.6931472, %v485_v63  ;;  %v157_v24 = vadd.f32 %v136_v8, %v658_v10 }
 0x2ef   :  { %v489_v11 = vpop.eup %488  ;;  %v142_v13 = vmul.f32 0.6931472, %v487_v7  ;;  %v130_v15 = vpop.xlane.xlu1 %129  ;;  %v156_v26 = vadd.f32 %v134_v12, %v648_v60  ;;  %v735_v9 = vsub.f32 %v617_v42, %v158_v20 }
 0x2f0   :  { %v140_v18 = vmul.f32 0.6931472, %v489_v11  ;;  %498 = vlog2.f32 %v130_v15  ;;  %v128_v19 = vpop.xlane.xlu0 %127  ;;  %v155_v34 = vadd.f32 %v132_v17, %v650_v61  ;;  %v739_v60 = vsub.f32 %v620_v43, %v157_v24 }
 0x2f1   :  { %500 = vlog2.f32 %v128_v19  ;;  %v160_v29 = vadd.f32 %v142_v13, %v670_v21  ;;  %v168_v16 = vsub.f32 %v609_v40, %v156_v26 }
 0x2f2   :  { %v491_v23 = vpop.eup %490  ;;  %v159_v35 = vadd.f32 %v140_v18, %v672_v22 }
 0x2f3   :  { %v493_v25 = vpop.eup %492  ;;  %v146_v30 = vmul.f32 0.6931472, %v491_v23  ;;  %v265_v33 = vpop.xlane.xlu1 %264  ;;  %v172_v61 = vsub.f32 %v624_v6, %v160_v29 }
 0x2f4   :  { %v144_v36 = vmul.f32 0.6931472, %v493_v25  ;;  %502 = vrcp.f32 %v265_v33  ;;  %v263_v38 = vpop.xlane.xlu0 %262  ;;  %v171_v52 = vsub.f32 %v626_v1, %v159_v35 }
 0x2f5   :  { %v162_v14 = vadd.f32 %v146_v30, %v686_v31  ;;  %504 = vrcp.f32 %v263_v38  ;;  %v167_v31 = vsub.f32 %v612_v41, %v155_v34 }
 0x2f6   :  { %v495_v10 = vpop.eup %494  ;;  %v161_v21 = vadd.f32 %v144_v36, %v688_v32  ;;  %v184_v32 = vadd.f32 %v735_v9, %v168_v16 }
 0x2f7   :  { %v497_v46 = vpop.eup %496  ;;  %v150_v49 = vmul.f32 0.6931472, %v495_v10  ;;  %v367_v22 = vpop.xlane.xlu1 %366  ;;  %v174_v27 = vsub.f32 %v630_v2, %v162_v14  ;;  %v179_v40 = vadd.f32 %v739_v60, %v167_v31 }
 0x2f8   :  { %v148_v42 = vmul.f32 0.6931472, %v497_v46  ;;  %506 = vrcp.f32 %v367_v22  ;;  %v365_v53 = vpop.xlane.xlu0 %364  ;;  %v173_v6 = vsub.f32 %v632_v0, %v161_v21  ;;  %v185_v59 = vadd.f32 %v184_v32, %v172_v61 }
 0x2f9   :  { %v164_v43 = vadd.f32 %v150_v49, %v696_v47  ;;  %508 = vrcp.f32 %v365_v53  ;;  %v180_v62 = vadd.f32 %v179_v40, %v171_v52 }
 0x2fa   :  { %v499_v28 = vpop.eup %498  ;;  %v163_v56 = vadd.f32 %v148_v42, %v698_v48  ;;  %v186_v63 = vadd.f32 %v185_v59, %v174_v27 }
 0x2fb   :  { %v501_v1 = vpop.eup %500  ;;  %v176_v57 = vsub.f32 %v636_v50, %v164_v43  ;;  %v154_v58 = vmul.f32 0.6931472, %v499_v28  ;;  %v181_v0 = vadd.f32 %v180_v62, %v173_v6 }
 0x2fc   :  { %v175_v41 = vsub.f32 %v638_v51, %v163_v56  ;;  %v152_v2 = vmul.f32 0.6931472, %v501_v1 }
 0x2fd   :  { %v166_v47 = vadd.f32 %v154_v58, %v704_v4  ;;  %v187_v12 = vadd.f32 %v186_v63, %v176_v57 }
 0x2fe   :  { %v503_v3 = vpop.eup %502  ;;  %v165_v7 = vadd.f32 %v152_v2, %v706_v5  ;;  %v182_v15 = vadd.f32 %v181_v0, %v175_v41 }
 0x2ff   :  { %v505_v8 = vpop.eup %504  ;;  %v178_v48 = vsub.f32 %v642_v54, %v166_v47  ;;  %v269_v11 = vmul.f32 0.0625, %v503_v3 }
 0x300   :  { %v177_v50 = vsub.f32 %v644_v55, %v165_v7  ;;  %v268_v13 = vmul.f32 0.0625, %v505_v8 }
 0x301   :  { %v188_v17 = vadd.f32 %v187_v12, %v178_v48  ;;  %v271_v51 = vmul.f32 %v269_v11, %v713_v37 }
 0x302   :  { %v507_v18 = vpop.eup %506  ;;  %v183_v19 = vadd.f32 %v182_v15, %v177_v50  ;;  %v270_v4 = vmul.f32 %v268_v13, %v716_v39 }
 0x303   :  { %v509_v20 = vpop.eup %508  ;;  %v371_v23 = vmul.f32 0.0625, %v507_v18  ;;  %v273_v5 = vmul.f32 16.0, %v271_v51  ;;  %v275_v24 = vsub.f32 %v188_v17, %v168_v16  ;;  %v377_v37 = vsub.f32 %v188_v17, %v735_v9 }
 0x304   :  { %v370_v25 = vmul.f32 0.0625, %v509_v20  ;;  %v272_v26 = vmul.f32 16.0, %v270_v4  ;;  %v274_v54 = vsub.f32 %v183_v19, %v167_v31  ;;  %v376_v39 = vsub.f32 %v183_v19, %v739_v60 }
 0x305   :  { %v277_v29 = vmul.f32 %v275_v24, %v273_v5  ;;  %v373_v30 = vmul.f32 %v371_v23, %v721_v44 }
 0x306   :  { %v276_v55 = vmul.f32 %v274_v54, %v272_v26  ;;  %v372_v33 = vmul.f32 %v370_v25, %v724_v45 }
 0x307   :  { %280 = vadd.xlane.f32.xlu1 %v277_v29  ;;  %v375_v34 = vmul.f32 16.0, %v373_v30 }
 0x308   :  { %278 = vadd.xlane.f32.xlu0 %v276_v55  ;;  %v374_v35 = vmul.f32 16.0, %v372_v33 }
 0x309   :  { %v379_v36 = vmul.f32 %v377_v37, %v375_v34 }
 0x30a   :  { %v378_v38 = vmul.f32 %v376_v39, %v374_v35 }
 0x30b   :  { %382 = vadd.xlane.f32.xlu1 %v379_v36 }
 0x30c   :  { %380 = vadd.xlane.f32.xlu0 %v378_v38 }
 0x394   :  { %v281_v14 = vpop.xlane.xlu1 %280 }
 0x395   :  { %v279_v10 = vpop.xlane.xlu0 %278 }
 0x396   :  { %v282_v21 = vadd.f32 %v281_v14, %v279_v10 }
 0x398   :  { %v283_v46 = vrot.slane %v282_v21, 4  ;;  %v383_v44 = vpop.xlane.xlu1 %382 }
 0x399   :  { %v381_v61 = vpop.xlane.xlu0 %380 }
 0x39a   :  { %v284_v49 = vadd.f32 %v283_v46, %v282_v21  ;;  %v384_v45 = vadd.f32 %v383_v44, %v381_v61 }
 0x39c   :  { %v285_v22 = vrot.slane %v284_v49, 2  ;;  %v385_v16 = vrot.slane %v384_v45, 4 }
 0x39e   :  { %v286_v52 = vadd.f32 %v285_v22, %v284_v49  ;;  %v386_v9 = vadd.f32 %v385_v16, %v384_v45 }
 0x3a0   :  { %v287_v42 = vrot.slane %v286_v52, 1  ;;  %v387_v53 = vrot.slane %v386_v9, 2 }
 0x3a2   :  { %v288_v31 = vadd.f32 %v287_v42, %v286_v52  ;;  %v388_v60 = vadd.f32 %v387_v53, %v386_v9 }
 0x3a4   :  { %v289_v27 = vmul.f32 0.00625, %v288_v31  ;;  %v389_v43 = vrot.slane %v388_v60, 1 }
 0x3a6   :  { %v390_v32 = vadd.f32 %v389_v43, %v388_v60  ;;  %v290_v28 = vsub.f32 0.0, %v289_v27 }
 0x3a8   :  { %v391_v6 = vmul.f32 0.00625, %v390_v32 }
 0x3aa   :  { %v392_v56 = vsub.f32 %v290_v28, %v391_v6 }
 0x3ac   :  { %394 = vst.msk [vmem:[#allocation5] sm:$0x1] %vm393_vm0, %v392_v56 }
 0x3ad   :  { %543 = shalt.err (!%p540_p12)
}
 0x3ae   :  { %s544_s25 = scalar_lea.hbm %s777_s1, 16 }
 0x3af   :  { %p545_p13 = scmp.ne.s32.totalorder %s777_s1, %s544_s25  ;;  %p548_p0 = scmp.lt.u32.totalorder %s544_s25, %s777_s1 }
 0x3b1   :  { %p550_p1 = pnand %p548_p0, %p545_p13 }
 0x3b3   :  { %553 = shalt.err (!%p550_p1)
}
 0x3b4   :  { %404 = dma.vmem_to_hbm [thread:$0]  %s402_s20, 16, %s777_s1, [#allocation4]  }
 0x3b5   :  { %556 = dma.done.wait [#allocation4], 16  }
 0x3b6   :  { %557 = vsyncadd [#allocation4], 4294967280 }
 0x3b7   :  { %408 = vsyncpa [#allocation3], 1 }
 0x3b8   :  { %409 = vsyncpa [#allocation4], 1 }

</bundles_post_ra>
